<compile_context>
chip_gen: v7x
topology: tpu7x:2x2x1
jax: 0.10.0
libtpu: 0.0.40
codegen_flags: <defaults>
</compile_context>

<pallas_src>
import functools

import jax
import jax.numpy as jnp
from jax.experimental import pallas as pl
from jax.experimental.pallas import tpu as pltpu


# ---------------------------------------------------------------------------
# Kernel: fused eval-mode FFN
# ---------------------------------------------------------------------------
def _ffn_kernel(x_ref, w1_ref, b1_ref, w2_ref, b2_ref, o_ref):
    """Per grid step:
      x_ref  : (TM, D_in)   streamed row tile (native input dtype)
      w1_ref : (D_in, H)    resident, compute dtype
      b1_ref : (1, H)       resident, f32
      w2_ref : (H, D_out)   resident, compute dtype
      b2_ref : (1, D_out)   resident, f32
      o_ref  : (TM, D_out)
    """
    # Cast the streamed tile on VMEM (no extra HBM round-trip in the wrapper).
    x = x_ref[...].astype(w1_ref.dtype)
    # Linear 1 (MXU, f32 accumulation) + bias + ReLU (VPU).
    h = jnp.dot(x, w1_ref[...], preferred_element_type=jnp.float32)
    h = jnp.maximum(h + b1_ref[...], 0.0)
    # Linear 2 (MXU) + bias; h cast to the weight dtype keeps bf16 MXU fast path.
    y = jnp.dot(h.astype(w2_ref.dtype), w2_ref[...],
                preferred_element_type=jnp.float32)
    o_ref[...] = (y + b2_ref[...]).astype(o_ref.dtype)


# ---------------------------------------------------------------------------
# Host-side helpers
# ---------------------------------------------------------------------------
def _vmem_budget_bytes():
    """Per-generation VMEM budget: ~3/4 of physical (48 MiB v7x, 96 MiB v5e/v6e)."""
    try:
        cap = int(pltpu.get_tpu_info().vmem_capacity_bytes)
    except Exception:
        cap = 64 * 1024 * 1024  # conservative fallback (v7x per-TensorCore size)
    return (cap * 3) // 4


def _pick_tile_m(n, per_row_bytes, resident_bytes, vmem_budget, tile_m_cap):
    """Largest multiple-of-32 row tile that fits VMEM; prefer >= 8 grid steps
    for large N (hides DMA prologue/epilogue, gives each v7x core several steps)."""
    avail = int(vmem_budget * 0.8) - resident_bytes
    tm = min(tile_m_cap, max(avail // max(per_row_bytes, 1), 32))
    if n >= 8 * 256:                 # large N: aim for >= 8 pipeline steps
        tm = min(tm, -(-n // 8))
    tm = max(32, (tm // 32) * 32)    # keep sublane-native layouts (f32/bf16/int8)
    if tm >= n:                      # single full-extent block is always legal
        return n
    return tm


def prepare_ffn_params(w1, b1, w2, b2, compute_dtype=None):
    """Cast weights to the MXU compute dtype ONCE (cache the result across calls).
    Biases stay f32 (added to the f32 accumulator) and are reshaped to (1, ...)."""
    if compute_dtype is None:
        compute_dtype = w1.dtype
    return (jnp.asarray(w1, compute_dtype),
            jnp.asarray(b1, jnp.float32).reshape(1, -1),
            jnp.asarray(w2, compute_dtype),
            jnp.asarray(b2, jnp.float32).reshape(1, -1))


@functools.partial(jax.jit, static_argnames=("tile_m",))
def heter_gcl_forward(x, w1, b1, w2, b2, *, tile_m=1024):
    """HeterGCL.forward (eval-mode FFN) as a single fused Pallas kernel.

    x  : [N, D_in]        (native dtype; cast to w1.dtype on VMEM inside the kernel)
    w1 : [D_in, H], w2 : [H, D_out]   (compute dtype, from prepare_ffn_params)
    b1 : [1, H] f32, b2 : [1, D_out] f32
    returns [N, D_out] in x.dtype
    """
    n, d_in = x.shape
    hdim = w1.shape[1]
    d_out = w2.shape[1]
    out_dtype = x.dtype

    x_bytes = jnp.dtype(x.dtype).itemsize
    w_bytes = jnp.dtype(w1.dtype).itemsize
    o_bytes = jnp.dtype(out_dtype).itemsize

    vmem_budget = _vmem_budget_bytes()
    resident = (d_in * hdim + hdim * d_out) * w_bytes + (hdim + d_out) * 4
    per_row = (2 * d_in * x_bytes            # double-buffered streamed x tile
               + 2 * d_out * o_bytes         # double-buffered out tile
               + d_in * w_bytes              # in-kernel cast of the x tile
               + hdim * 4 + hdim * w_bytes)  # f32 intermediate h + its cast
    tm = _pick_tile_m(n, per_row, resident, vmem_budget, tile_m)
    grid = (pl.cdiv(n, tm),)                 # ragged last block is masked by Pallas

    def _const(shape):
        # Resident operand: constant index_map -> single-buffer it to save VMEM.
        try:
            return pl.BlockSpec(shape, lambda i: (0,) * len(shape),
                                pipeline_mode=pl.Buffered(1))
        except TypeError:  # older Pallas without the pipeline_mode kwarg
            return pl.BlockSpec(shape, lambda i: (0,) * len(shape))

    cost = pl.CostEstimate(
        flops=2 * n * (d_in * hdim + hdim * d_out),
        transcendentals=0,
        bytes_accessed=(n * d_in * x_bytes
                        + (d_in * hdim + hdim * d_out) * w_bytes
                        + (hdim + d_out) * 4
                        + n * d_out * o_bytes),
    )

    return pl.pallas_call(
        _ffn_kernel,
        out_shape=jax.ShapeDtypeStruct((n, d_out), out_dtype),
        grid=grid,
        in_specs=[
            pl.BlockSpec((tm, d_in), lambda i: (i, 0)),   # x: streamed row tile
            _const((d_in, hdim)),                         # W1: resident
            _const((1, hdim)),                            # b1: resident
            _const((hdim, d_out)),                        # W2: resident
            _const((1, d_out)),                           # b2: resident
        ],
        out_specs=pl.BlockSpec((tm, d_out), lambda i: (i, 0)),
        compiler_params=pltpu.CompilerParams(
            dimension_semantics=("parallel",),
            vmem_limit_bytes=int(vmem_budget),
        ),
        cost_estimate=cost,
    )(x, w1, b1, w2, b2)


def _init_params(key, d_in, hidden, d_out, dtype=jnp.float32):
    """Deterministic init mimicking nn.Linear's uniform(-1/sqrt(fan_in), 1/sqrt(fan_in))."""
    k1, k2, k3, k4 = jax.random.split(key, 4)
    bound1 = 1.0 / jnp.sqrt(d_in)
    bound2 = 1.0 / jnp.sqrt(hidden)
    w1 = jax.random.uniform(k1, (d_in, hidden), dtype, -bound1, bound1)
    b1 = jax.random.uniform(k2, (hidden,), dtype, -bound1, bound1)
    w2 = jax.random.uniform(k3, (hidden, d_out), dtype, -bound2, bound2)
    b2 = jax.random.uniform(k4, (d_out,), dtype, -bound2, bound2)
    return w1, b1, w2, b2


if __name__ == "__main__":
    # Small shapes consistent with the module: N nodes, input_size, hidden_size, output_size.
    N = 200          # deliberately NOT a multiple of the small test tile
    D_IN = 64        # dataset.graph['node_feat'].shape[1]
    HIDDEN = 32      # args.hidden_size
    D_OUT = 16       # args.output_size

    key = jax.random.PRNGKey(0)
    kx, kp = jax.random.split(key)
    x = jax.random.normal(kx, (N, D_IN), jnp.float32)
    w1, b1, w2, b2 = _init_params(kp, D_IN, HIDDEN, D_OUT)

    # Reference in plain JAX (same eval-mode FFN).
    ref = jnp.maximum(x @ w1 + b1, 0.0) @ w2 + b2

    # --- f32 compute path, default (single full-extent block) ---
    p_f32 = prepare_ffn_params(w1, b1, w2, b2, jnp.float32)
    out_f32 = jax.block_until_ready(heter_gcl_forward(x, *p_f32))
    assert out_f32.shape == (N, D_OUT)
    assert jnp.allclose(out_f32, ref, atol=1e-5, rtol=1e-5), "f32 mismatch vs reference"

    # --- ragged-grid path: grid = cdiv(200, 64) = 4, last block masked by Pallas ---
    out_ragged = jax.block_until_ready(heter_gcl_forward(x, *p_f32, tile_m=64))
    assert out_ragged.shape == (N, D_OUT)
    assert jnp.allclose(out_ragged, ref, atol=1e-5, rtol=1e-5), "ragged-grid mismatch"

    # --- bf16 weight / MXU fast path (f32 accumulation; x cast on VMEM in-kernel) ---
    p_bf16 = prepare_ffn_params(w1, b1, w2, b2, jnp.bfloat16)
    out_bf16 = jax.block_until_ready(heter_gcl_forward(x, *p_bf16))
    assert out_bf16.shape == (N, D_OUT)
    assert jnp.allclose(out_bf16.astype(jnp.float32), ref, atol=5e-2, rtol=5e-2), \
        "bf16 mismatch vs reference"

    print("KERNEL_OK")
</pallas_src>

<mosaic_0001>
module attributes {stable_mosaic.version = 11 : i64} {
  func.func @_ffn_kernel(%arg0: i32, %arg1: memref<200x64xf32, #tpu.memory_space<vmem>>, %arg2: memref<64x32xf32, #tpu.memory_space<vmem>>, %arg3: memref<1x32xf32, #tpu.memory_space<vmem>>, %arg4: memref<32x16xf32, #tpu.memory_space<vmem>>, %arg5: memref<1x16xf32, #tpu.memory_space<vmem>>, %arg6: memref<200x16xf32, #tpu.memory_space<vmem>>) attributes {dimension_semantics = [#tpu.dimension_semantics<parallel>], iteration_bounds = array<i64: 1>, scalar_prefetch = 0 : i64, scratch_operands = 0 : i64, tpu.core_type = #tpu.core_type<tc>, window_params = [{transform_indices = @transform_0, window_bounds = array<i64: 200, 64>}, {pipeline_mode = #tpu.pipeline_mode<synchronous>, transform_indices = @transform_1, window_bounds = array<i64: 64, 32>}, {pipeline_mode = #tpu.pipeline_mode<synchronous>, transform_indices = @transform_2, window_bounds = array<i64: 1, 32>}, {pipeline_mode = #tpu.pipeline_mode<synchronous>, transform_indices = @transform_3, window_bounds = array<i64: 32, 16>}, {pipeline_mode = #tpu.pipeline_mode<synchronous>, transform_indices = @transform_4, window_bounds = array<i64: 1, 16>}, {transform_indices = @transform_5, window_bounds = array<i64: 200, 16>}]} {
    %c0 = arith.constant 0 : index
    %c0_0 = arith.constant 0 : index
    %0 = vector.load %arg1[%c0, %c0_0] : memref<200x64xf32, #tpu.memory_space<vmem>>, vector<200x64xf32>
    %c0_1 = arith.constant 0 : index
    %c0_2 = arith.constant 0 : index
    %1 = vector.load %arg2[%c0_1, %c0_2] : memref<64x32xf32, #tpu.memory_space<vmem>>, vector<64x32xf32>
    %cst = arith.constant dense<0.000000e+00> : vector<200x32xf32>
    %2 = tpu.matmul %0, %1, %cst {dimension_numbers = #tpu.dot_dimension_numbers<[1], [0], [0], [1], [0, 0, 1, 1], [], []>} : vector<200x64xf32>, vector<64x32xf32>, vector<200x32xf32> -> vector<200x32xf32>
    %c0_3 = arith.constant 0 : index
    %c0_4 = arith.constant 0 : index
    %3 = vector.load %arg3[%c0_3, %c0_4] : memref<1x32xf32, #tpu.memory_space<vmem>>, vector<1x32xf32>
    %4 = vector.broadcast %3 : vector<1x32xf32> to vector<200x32xf32>
    %5 = arith.addf %2, %4 : vector<200x32xf32>
    %cst_5 = arith.constant 0.000000e+00 : f32
    %6 = vector.broadcast %cst_5 : f32 to vector<200x32xf32>
    %7 = arith.maximumf %5, %6 : vector<200x32xf32>
    %c0_6 = arith.constant 0 : index
    %c0_7 = arith.constant 0 : index
    %8 = vector.load %arg4[%c0_6, %c0_7] : memref<32x16xf32, #tpu.memory_space<vmem>>, vector<32x16xf32>
    %cst_8 = arith.constant dense<0.000000e+00> : vector<200x16xf32>
    %9 = tpu.matmul %7, %8, %cst_8 {dimension_numbers = #tpu.dot_dimension_numbers<[1], [0], [0], [1], [0, 0, 1, 1], [], []>} : vector<200x32xf32>, vector<32x16xf32>, vector<200x16xf32> -> vector<200x16xf32>
    %c0_9 = arith.constant 0 : index
    %c0_10 = arith.constant 0 : index
    %10 = vector.load %arg5[%c0_9, %c0_10] : memref<1x16xf32, #tpu.memory_space<vmem>>, vector<1x16xf32>
    %11 = vector.broadcast %10 : vector<1x16xf32> to vector<200x16xf32>
    %12 = arith.addf %9, %11 : vector<200x16xf32>
    %c0_11 = arith.constant 0 : index
    %c0_12 = arith.constant 0 : index
    %13 = vector.load %arg6[%c0_11, %c0_12] : memref<200x16xf32, #tpu.memory_space<vmem>>, vector<200x16xf32>
    tpu.vector_store %arg6[%c0_11, %c0_12], %12 {strides = array<i32>} : memref<200x16xf32, #tpu.memory_space<vmem>>, vector<200x16xf32>,
    return
  }
  func.func @transform_0(%arg0: i32) -> (i32, i32) {
    %c0_i32 = arith.constant 0 : i32
    %c0_i32_0 = arith.constant 0 : i32
    return %arg0, %c0_i32 : i32, i32
  }
  func.func @transform_1(%arg0: i32) -> (i32, i32) {
    %c0_i32 = arith.constant 0 : i32
    %c0_i32_0 = arith.constant 0 : i32
    %c0_i32_1 = arith.constant 0 : i32
    return %c0_i32, %c0_i32_0 : i32, i32
  }
  func.func @transform_2(%arg0: i32) -> (i32, i32) {
    %c0_i32 = arith.constant 0 : i32
    %c0_i32_0 = arith.constant 0 : i32
    %c0_i32_1 = arith.constant 0 : i32
    return %c0_i32, %c0_i32_0 : i32, i32
  }
  func.func @transform_3(%arg0: i32) -> (i32, i32) {
    %c0_i32 = arith.constant 0 : i32
    %c0_i32_0 = arith.constant 0 : i32
    %c0_i32_1 = arith.constant 0 : i32
    return %c0_i32, %c0_i32_0 : i32, i32
  }
  func.func @transform_4(%arg0: i32) -> (i32, i32) {
    %c0_i32 = arith.constant 0 : i32
    %c0_i32_0 = arith.constant 0 : i32
    %c0_i32_1 = arith.constant 0 : i32
    return %c0_i32, %c0_i32_0 : i32, i32
  }
  func.func @transform_5(%arg0: i32) -> (i32, i32) {
    %c0_i32 = arith.constant 0 : i32
    %c0_i32_0 = arith.constant 0 : i32
    return %arg0, %c0_i32 : i32, i32
  }
}

</mosaic_0001>

<bundles_post_ra>
// kernel: heter_gcl_forward.1
= control target key start
LH: loop header
LB: loop body
LE: loop exit
PB: predicated region body
PF: predicated region fallthrough
CT: control target
= control target key end

     0   :  { %v967_v0 = vmov 0.0|0.0   ;;  %vm968_vm0 = vmmov 0   ;;  %v969_v4 = vmov 0.0   ;;  %vm60_vm1 = vcmask 523264   ;;  %s1421_s1 = inlined_call_operand.vmem [shape: f32[64,32], index: 1, kind: input, shape index: {}]   ;;  %s1422_s3 = inlined_call_operand.vmem [shape: f32[32,16], index: 3, kind: input, shape index: {}]   ;;  %s1423_s0 = inlined_call_operand.vmem [shape: f32[200,64], index: 0, kind: input, shape index: {}]   ;;  %s1424_s2 = inlined_call_operand.vmem [shape: f32[1,32], index: 2, kind: input, shape index: {}]   ;;  %s1425_s4 = inlined_call_operand.vmem [shape: f32[1,16], index: 4, kind: input, shape index: {}]   ;;  %s1426_s5 = inlined_call_operand.vmem [shape: f32[200,16], index: 5, kind: output, shape index: {}]  }
   0x1   :  { %946 = vmatprep.subr.bf16.mxu0 %v967_v0  ;;  %v45_v1 = vld [vmem:[%s1421_s1] sm:$0xff]  ;;  %v46_v2 = vld [vmem:[%s1421_s1 + $0x8] sm:$0xff]  ;;  %v47_v3 = vld [vmem:[%s1421_s1 + $0x10] sm:$0xff]  ;;  %788 = vmatprep.mubr.msk.f32.mxu0 %vm968_vm0, %v969_v4  ;;  %vm362_vm2 = vcmask 261120   ;;  %vm628_vm3 = vcmask 130048  }
   0x2   :  { %v947_v5 = vpack.c.bf16 %v46_v2, %v45_v1  ;;  %v48_v6 = vld [vmem:[%s1421_s1 + $0x18] sm:$0xff]  ;;  %958 = vmatprep.subr.bf16.mxu1 %v967_v0  ;;  %871 = vmatprep.mubr.msk.f32.mxu1 %vm968_vm0, %v969_v4  ;;  %v49_v8 = vld [vmem:[%s1421_s1 + $0x20] sm:$0xff]  ;;  %v50_v9 = vld [vmem:[%s1421_s1 + $0x28] sm:$0xff] }
   0x3   :  { %v950_v7 = vpack.c.bf16 %v48_v6, %v47_v3  ;;  %v953_v10 = vpack.c.bf16 %v50_v9, %v49_v8  ;;  %v51_v11 = vld [vmem:[%s1421_s1 + $0x30] sm:$0xff]  ;;  %v52_v12 = vld [vmem:[%s1421_s1 + $0x38] sm:$0xff]  ;;  %v351_v14 = vld [vmem:[%s1422_s3] sm:$0xff] }
   0x4   :  { %948 = vmatpush3.bf16.msra.mxu0 %v947_v5  ;;  %v956_v13 = vpack.c.bf16 %v52_v12, %v51_v11  ;;  %v352_v15 = vld [vmem:[%s1422_s3 + $0x8] sm:$0xff]  ;;  %v20_v17 = vld [vmem:[%s1423_s0] sm:$0xff]  ;;  %v22_v19 = vld [vmem:[%s1423_s0 + $0x10] sm:$0xff] }
   0x5   :  { %949 = vmatprep.subr.bf16.mxu0 %v967_v0  ;;  %v959_v16 = vpack.c.bf16 %v352_v15, %v351_v14  ;;  %v21_v18 = vld [vmem:[%s1423_s0 + $0x8] sm:$0xff]  ;;  %v23_v20 = vld [vmem:[%s1423_s0 + $0x18] sm:$0xff]  ;;  %v24_v21 = vld [vmem:[%s1423_s0 + $0x20] sm:$0xff] }
   0x6   :  { %v25_v22 = vld [vmem:[%s1423_s0 + $0x28] sm:$0xff]  ;;  %v26_v23 = vld [vmem:[%s1423_s0 + $0x30] sm:$0xff]  ;;  %v27_v24 = vld [vmem:[%s1423_s0 + $0x38] sm:$0xff] }
   0x7   :  { %960 = vmatpush3.bf16.msra.mxu1 %v959_v16  ;;  %v28_v25 = vld [vmem:[%s1423_s0 + $0x40] sm:$0xff]  ;;  %v29_v26 = vld [vmem:[%s1423_s0 + $0x48] sm:$0xff]  ;;  %v30_v27 = vld [vmem:[%s1423_s0 + $0x50] sm:$0xff] }
   0x8   :  { %951 = vmatpush3.bf16.msra.mxu0 %v950_v7  ;;  %961 = vmatprep.subr.bf16.mxu1 %v967_v0  ;;  %v31_v28 = vld [vmem:[%s1423_s0 + $0x58] sm:$0xff]  ;;  %v32_v29 = vld [vmem:[%s1423_s0 + $0x60] sm:$0xff]  ;;  %v33_v30 = vld [vmem:[%s1423_s0 + $0x68] sm:$0xff] }
   0x9   :  { %952 = vmatprep.subr.bf16.mxu0 %v967_v0  ;;  %v34_v31 = vld [vmem:[%s1423_s0 + $0x70] sm:$0xff]  ;;  %v35_v32 = vld [vmem:[%s1423_s0 + $0x78] sm:$0xff]  ;;  %v36_v33 = vld [vmem:[%s1423_s0 + $0x80] sm:$0xff] }
   0xa   :  { %v37_v34 = vld [vmem:[%s1423_s0 + $0x88] sm:$0xff]  ;;  %v38_v35 = vld [vmem:[%s1423_s0 + $0x90] sm:$0xff]  ;;  %v39_v36 = vld [vmem:[%s1423_s0 + $0x98] sm:$0xff] }
   0xb   :  { %v40_v37 = vld [vmem:[%s1423_s0 + $0xa0] sm:$0xff]  ;;  %v41_v38 = vld [vmem:[%s1423_s0 + $0xa8] sm:$0xff]  ;;  %v353_v39 = vld [vmem:[%s1422_s3 + $0x10] sm:$0xff] }
   0xc   :  { %954 = vmatpush3.bf16.msra.mxu0 %v953_v10  ;;  %v354_v40 = vld [vmem:[%s1422_s3 + $0x18] sm:$0xff]  ;;  %v42_v42 = vld [vmem:[%s1423_s0 + $0xb0] sm:$0xff]  ;;  %v44_v44 = vld [vmem:[%s1423_s0 + $0xc0] sm:$0xff] }
   0xd   :  { %955 = vmatprep.subr.bf16.mxu0 %v967_v0  ;;  %v962_v41 = vpack.c.bf16 %v354_v40, %v353_v39  ;;  %v43_v43 = vld [vmem:[%s1423_s0 + $0xb8] sm:$0xff]  ;;  %v1191_v45 = vld [vmem:[%s1424_s2] ss:$0 sm:$0xff] }
   0xf   :  { %963 = vmatpush3.bf16.msra.mxu1 %v962_v41 }
  0x10   :  { %957 = vmatpush3.bf16.msra.mxu0 %v956_v13 }
  0x13   :  { %789 = vmatmul.mubr.msk.f32.vlgmr.msra.gmra.mrb[0].mxu0 %vm60_vm1, %v20_v17 }
  0x14   :  { %791 = vmatprep.mubr.msk.f32.mxu0 %vm968_vm0, %v969_v4 }
  0x17   :  { %792 = vmatmul.mubr.msk.f32.gmra.mrb[2].mxu0 %vm60_vm1, %v21_v18 }
  0x18   :  { %794 = vmatprep.mubr.msk.f32.mxu0 %vm968_vm0, %v969_v4 }
  0x1b   :  { %795 = vmatmul.mubr.msk.f32.gmra.mrb[4].mxu0 %vm60_vm1, %v22_v19 }
  0x1c   :  { %797 = vmatprep.mubr.msk.f32.mxu0 %vm968_vm0, %v969_v4 }
  0x1f   :  { %798 = vmatmul.mubr.msk.f32.gmra.mrb[6].mxu0 %vm60_vm1, %v23_v20 }
  0x20   :  { %800 = vmatprep.mubr.msk.f32.mxu0 %vm968_vm0, %v969_v4 }
  0x23   :  { %801 = vmatmul.mubr.msk.f32.gmra.mrb[8].mxu0 %vm60_vm1, %v24_v21 }
  0x24   :  { %803 = vmatprep.mubr.msk.f32.mxu0 %vm968_vm0, %v969_v4 }
  0x27   :  { %804 = vmatmul.mubr.msk.f32.gmra.mrb[10].mxu0 %vm60_vm1, %v25_v22 }
  0x28   :  { %806 = vmatprep.mubr.msk.f32.mxu0 %vm968_vm0, %v969_v4 }
  0x2b   :  { %807 = vmatmul.mubr.msk.f32.gmra.mrb[12].mxu0 %vm60_vm1, %v26_v23 }
  0x2c   :  { %809 = vmatprep.mubr.msk.f32.mxu0 %vm968_vm0, %v969_v4 }
  0x2f   :  { %810 = vmatmul.mubr.msk.f32.gmra.mrb[14].mxu0 %vm60_vm1, %v27_v24 }
  0x30   :  { %812 = vmatprep.mubr.msk.f32.mxu0 %vm968_vm0, %v969_v4 }
  0x33   :  { %813 = vmatmul.mubr.msk.f32.gmra.mrb[16].mxu0 %vm60_vm1, %v28_v25 }
  0x34   :  { %815 = vmatprep.mubr.msk.f32.mxu0 %vm968_vm0, %v969_v4 }
  0x37   :  { %816 = vmatmul.mubr.msk.f32.gmra.mrb[18].mxu0 %vm60_vm1, %v29_v26 }
  0x38   :  { %818 = vmatprep.mubr.msk.f32.mxu0 %vm968_vm0, %v969_v4 }
  0x3b   :  { %819 = vmatmul.mubr.msk.f32.gmra.mrb[20].mxu0 %vm60_vm1, %v30_v27 }
  0x3c   :  { %821 = vmatprep.mubr.msk.f32.mxu0 %vm968_vm0, %v969_v4 }
  0x3f   :  { %822 = vmatmul.mubr.msk.f32.gmra.mrb[22].mxu0 %vm60_vm1, %v31_v28 }
  0x40   :  { %824 = vmatprep.mubr.msk.f32.mxu0 %vm968_vm0, %v969_v4 }
  0x43   :  { %825 = vmatmul.mubr.msk.f32.gmra.mrb[24].mxu0 %vm60_vm1, %v32_v29 }
  0x44   :  { %827 = vmatprep.mubr.msk.f32.mxu0 %vm968_vm0, %v969_v4 }
  0x47   :  { %828 = vmatmul.mubr.msk.f32.gmra.mrb[26].mxu0 %vm60_vm1, %v33_v30 }
  0x48   :  { %830 = vmatprep.mubr.msk.f32.mxu0 %vm968_vm0, %v969_v4 }
  0x4b   :  { %831 = vmatmul.mubr.msk.f32.gmra.mrb[28].mxu0 %vm60_vm1, %v34_v31 }
  0x4c   :  { %833 = vmatprep.mubr.msk.f32.mxu0 %vm968_vm0, %v969_v4 }
  0x4f   :  { %834 = vmatmul.mubr.msk.f32.gmra.mrb[30].mxu0 %vm60_vm1, %v35_v32 }
  0x50   :  { %836 = vmatprep.mubr.msk.f32.mxu0 %vm968_vm0, %v969_v4 }
  0x53   :  { %837 = vmatmul.mubr.msk.f32.gmra.mrb[32].mxu0 %vm60_vm1, %v36_v33 }
  0x54   :  { %839 = vmatprep.mubr.msk.f32.mxu0 %vm968_vm0, %v969_v4 }
  0x57   :  { %840 = vmatmul.mubr.msk.f32.gmra.mrb[34].mxu0 %vm60_vm1, %v37_v34 }
  0x58   :  { %842 = vmatprep.mubr.msk.f32.mxu0 %vm968_vm0, %v969_v4 }
  0x5b   :  { %843 = vmatmul.mubr.msk.f32.gmra.mrb[36].mxu0 %vm60_vm1, %v38_v35 }
  0x5c   :  { %845 = vmatprep.mubr.msk.f32.mxu0 %vm968_vm0, %v969_v4 }
  0x5f   :  { %846 = vmatmul.mubr.msk.f32.gmra.mrb[38].mxu0 %vm60_vm1, %v39_v36 }
  0x60   :  { %848 = vmatprep.mubr.msk.f32.mxu0 %vm968_vm0, %v969_v4 }
  0x63   :  { %849 = vmatmul.mubr.msk.f32.gmra.mrb[40].mxu0 %vm60_vm1, %v40_v37 }
  0x64   :  { %851 = vmatprep.mubr.msk.f32.mxu0 %vm968_vm0, %v969_v4 }
  0x67   :  { %852 = vmatmul.mubr.msk.f32.gmra.mrb[42].mxu0 %vm60_vm1, %v41_v38 }
  0x68   :  { %854 = vmatprep.mubr.msk.f32.mxu0 %vm968_vm0, %v969_v4 }
  0x6b   :  { %855 = vmatmul.mubr.msk.f32.gmra.mrb[44].mxu0 %vm60_vm1, %v42_v42 }
  0x6c   :  { %857 = vmatprep.mubr.msk.f32.mxu0 %vm968_vm0, %v969_v4 }
  0x6f   :  { %858 = vmatmul.mubr.msk.f32.gmra.mrb[46].mxu0 %vm60_vm1, %v43_v43 }
  0x70   :  { %860 = vmatprep.mubr.msk.f32.mxu0 %vm968_vm0, %v969_v4 }
  0x73   :  { %861 = vmatmul.mubr.msk.f32.gmra.mrb[48].mxu0 %vm60_vm1, %v44_v44 }
  0xe6   :  { %v202_v46 = vpop.f32.mrb[0].mxu0 }
  0xe7   :  { %v203_v47 = vadd.f32 %v1191_v45, %v202_v46  ;;  %v790_v48 = vpop.f32.mrb[1].mxu0 }
  0xe9   :  { %v326_v49 = vmax.f32 %v203_v47, 0.0 }
  0xea   :  { %v207_v50 = vpop.f32.mrb[2].mxu0 }
  0xeb   :  { %v208_v51 = vadd.f32 %v1191_v45, %v207_v50  ;;  %v793_v52 = vpop.f32.mrb[3].mxu0  ;;  %872 = vmatmul.mubr.msk.f32.vlgmr.msra.gmra.mrb[0].mxu1 %vm362_vm2, %v326_v49 }
  0xec   :  { %874 = vmatprep.mubr.msk.f32.mxu1 %vm968_vm0, %v969_v4 }
  0xed   :  { %v327_v53 = vmax.f32 %v208_v51, 0.0 }
  0xee   :  { %v212_v54 = vpop.f32.mrb[4].mxu0 }
  0xef   :  { %v213_v55 = vadd.f32 %v1191_v45, %v212_v54  ;;  %v796_v56 = vpop.f32.mrb[5].mxu0  ;;  %875 = vmatmul.mubr.msk.f32.gmra.mrb[2].mxu1 %vm362_vm2, %v327_v53 }
  0xf0   :  { %877 = vmatprep.mubr.msk.f32.mxu1 %vm968_vm0, %v969_v4 }
  0xf1   :  { %v328_v57 = vmax.f32 %v213_v55, 0.0 }
  0xf2   :  { %v217_v58 = vpop.f32.mrb[6].mxu0 }
  0xf3   :  { %v218_v59 = vadd.f32 %v1191_v45, %v217_v58  ;;  %v799_v60 = vpop.f32.mrb[7].mxu0  ;;  %878 = vmatmul.mubr.msk.f32.gmra.mrb[4].mxu1 %vm362_vm2, %v328_v57 }
  0xf4   :  { %880 = vmatprep.mubr.msk.f32.mxu1 %vm968_vm0, %v969_v4 }
  0xf5   :  { %v329_v61 = vmax.f32 %v218_v59, 0.0 }
  0xf6   :  { %v222_v62 = vpop.f32.mrb[8].mxu0 }
  0xf7   :  { %v223_v63 = vadd.f32 %v1191_v45, %v222_v62  ;;  %v802_v0 = vpop.f32.mrb[9].mxu0  ;;  %881 = vmatmul.mubr.msk.f32.gmra.mrb[6].mxu1 %vm362_vm2, %v329_v61 }
  0xf8   :  { %883 = vmatprep.mubr.msk.f32.mxu1 %vm968_vm0, %v969_v4 }
  0xf9   :  { %v330_v1 = vmax.f32 %v223_v63, 0.0 }
  0xfa   :  { %v227_v2 = vpop.f32.mrb[10].mxu0 }
  0xfb   :  { %v228_v3 = vadd.f32 %v1191_v45, %v227_v2  ;;  %v805_v5 = vpop.f32.mrb[11].mxu0  ;;  %884 = vmatmul.mubr.msk.f32.gmra.mrb[8].mxu1 %vm362_vm2, %v330_v1 }
  0xfc   :  { %886 = vmatprep.mubr.msk.f32.mxu1 %vm968_vm0, %v969_v4 }
  0xfd   :  { %v331_v6 = vmax.f32 %v228_v3, 0.0 }
  0xfe   :  { %v232_v7 = vpop.f32.mrb[12].mxu0 }
  0xff   :  { %v233_v8 = vadd.f32 %v1191_v45, %v232_v7  ;;  %v808_v9 = vpop.f32.mrb[13].mxu0  ;;  %887 = vmatmul.mubr.msk.f32.gmra.mrb[10].mxu1 %vm362_vm2, %v331_v6 }
 0x100   :  { %889 = vmatprep.mubr.msk.f32.mxu1 %vm968_vm0, %v969_v4 }
 0x101   :  { %v332_v10 = vmax.f32 %v233_v8, 0.0 }
 0x102   :  { %v237_v11 = vpop.f32.mrb[14].mxu0 }
 0x103   :  { %v238_v12 = vadd.f32 %v1191_v45, %v237_v11  ;;  %v811_v13 = vpop.f32.mrb[15].mxu0  ;;  %890 = vmatmul.mubr.msk.f32.gmra.mrb[12].mxu1 %vm362_vm2, %v332_v10 }
 0x104   :  { %892 = vmatprep.mubr.msk.f32.mxu1 %vm968_vm0, %v969_v4 }
 0x105   :  { %v333_v14 = vmax.f32 %v238_v12, 0.0 }
 0x106   :  { %v242_v15 = vpop.f32.mrb[16].mxu0 }
 0x107   :  { %v243_v16 = vadd.f32 %v1191_v45, %v242_v15  ;;  %v814_v17 = vpop.f32.mrb[17].mxu0  ;;  %893 = vmatmul.mubr.msk.f32.gmra.mrb[14].mxu1 %vm362_vm2, %v333_v14 }
 0x108   :  { %895 = vmatprep.mubr.msk.f32.mxu1 %vm968_vm0, %v969_v4 }
 0x109   :  { %v334_v18 = vmax.f32 %v243_v16, 0.0 }
 0x10a   :  { %v247_v19 = vpop.f32.mrb[18].mxu0 }
 0x10b   :  { %v248_v20 = vadd.f32 %v1191_v45, %v247_v19  ;;  %v817_v21 = vpop.f32.mrb[19].mxu0  ;;  %896 = vmatmul.mubr.msk.f32.gmra.mrb[16].mxu1 %vm362_vm2, %v334_v18 }
 0x10c   :  { %898 = vmatprep.mubr.msk.f32.mxu1 %vm968_vm0, %v969_v4  ;;  %v1294_v21 = vld [vmem:[%s1425_s4] ss:$0 sm:$0xff] }
 0x10d   :  { %v335_v22 = vmax.f32 %v248_v20, 0.0 }
 0x10e   :  { %v252_v23 = vpop.f32.mrb[20].mxu0 }
 0x10f   :  { %v253_v24 = vadd.f32 %v1191_v45, %v252_v23  ;;  %v820_v25 = vpop.f32.mrb[21].mxu0  ;;  %899 = vmatmul.mubr.msk.f32.gmra.mrb[18].mxu1 %vm362_vm2, %v335_v22 }
 0x110   :  { %901 = vmatprep.mubr.msk.f32.mxu1 %vm968_vm0, %v969_v4 }
 0x111   :  { %v336_v26 = vmax.f32 %v253_v24, 0.0 }
 0x112   :  { %v257_v27 = vpop.f32.mrb[22].mxu0 }
 0x113   :  { %v258_v28 = vadd.f32 %v1191_v45, %v257_v27  ;;  %v823_v29 = vpop.f32.mrb[23].mxu0  ;;  %902 = vmatmul.mubr.msk.f32.gmra.mrb[20].mxu1 %vm362_vm2, %v336_v26 }
 0x114   :  { %904 = vmatprep.mubr.msk.f32.mxu1 %vm968_vm0, %v969_v4 }
 0x115   :  { %v337_v30 = vmax.f32 %v258_v28, 0.0 }
 0x116   :  { %v262_v31 = vpop.f32.mrb[24].mxu0 }
 0x117   :  { %v263_v32 = vadd.f32 %v1191_v45, %v262_v31  ;;  %v826_v33 = vpop.f32.mrb[25].mxu0  ;;  %905 = vmatmul.mubr.msk.f32.gmra.mrb[22].mxu1 %vm362_vm2, %v337_v30 }
 0x118   :  { %907 = vmatprep.mubr.msk.f32.mxu1 %vm968_vm0, %v969_v4 }
 0x119   :  { %v338_v34 = vmax.f32 %v263_v32, 0.0 }
 0x11a   :  { %v267_v35 = vpop.f32.mrb[26].mxu0 }
 0x11b   :  { %v268_v36 = vadd.f32 %v1191_v45, %v267_v35  ;;  %v829_v37 = vpop.f32.mrb[27].mxu0  ;;  %908 = vmatmul.mubr.msk.f32.gmra.mrb[24].mxu1 %vm362_vm2, %v338_v34 }
 0x11c   :  { %910 = vmatprep.mubr.msk.f32.mxu1 %vm968_vm0, %v969_v4 }
 0x11d   :  { %v339_v38 = vmax.f32 %v268_v36, 0.0 }
 0x11e   :  { %v272_v39 = vpop.f32.mrb[28].mxu0 }
 0x11f   :  { %v273_v40 = vadd.f32 %v1191_v45, %v272_v39  ;;  %v832_v41 = vpop.f32.mrb[29].mxu0  ;;  %911 = vmatmul.mubr.msk.f32.gmra.mrb[26].mxu1 %vm362_vm2, %v339_v38 }
 0x120   :  { %913 = vmatprep.mubr.msk.f32.mxu1 %vm968_vm0, %v969_v4 }
 0x121   :  { %v340_v42 = vmax.f32 %v273_v40, 0.0 }
 0x122   :  { %v277_v43 = vpop.f32.mrb[30].mxu0 }
 0x123   :  { %v278_v44 = vadd.f32 %v1191_v45, %v277_v43  ;;  %v835_v46 = vpop.f32.mrb[31].mxu0  ;;  %914 = vmatmul.mubr.msk.f32.gmra.mrb[28].mxu1 %vm362_vm2, %v340_v42 }
 0x124   :  { %916 = vmatprep.mubr.msk.f32.mxu1 %vm968_vm0, %v969_v4 }
 0x125   :  { %v341_v47 = vmax.f32 %v278_v44, 0.0 }
 0x126   :  { %v282_v48 = vpop.f32.mrb[32].mxu0 }
 0x127   :  { %v283_v49 = vadd.f32 %v1191_v45, %v282_v48  ;;  %v838_v50 = vpop.f32.mrb[33].mxu0  ;;  %917 = vmatmul.mubr.msk.f32.gmra.mrb[30].mxu1 %vm362_vm2, %v341_v47 }
 0x128   :  { %919 = vmatprep.mubr.msk.f32.mxu1 %vm968_vm0, %v969_v4 }
 0x129   :  { %v342_v51 = vmax.f32 %v283_v49, 0.0 }
 0x12a   :  { %v287_v52 = vpop.f32.mrb[34].mxu0 }
 0x12b   :  { %v288_v53 = vadd.f32 %v1191_v45, %v287_v52  ;;  %v841_v54 = vpop.f32.mrb[35].mxu0  ;;  %920 = vmatmul.mubr.msk.f32.gmra.mrb[32].mxu1 %vm362_vm2, %v342_v51 }
 0x12c   :  { %922 = vmatprep.mubr.msk.f32.mxu1 %vm968_vm0, %v969_v4 }
 0x12d   :  { %v343_v55 = vmax.f32 %v288_v53, 0.0 }
 0x12e   :  { %v292_v56 = vpop.f32.mrb[36].mxu0 }
 0x12f   :  { %v293_v57 = vadd.f32 %v1191_v45, %v292_v56  ;;  %v844_v58 = vpop.f32.mrb[37].mxu0  ;;  %923 = vmatmul.mubr.msk.f32.gmra.mrb[34].mxu1 %vm362_vm2, %v343_v55 }
 0x130   :  { %925 = vmatprep.mubr.msk.f32.mxu1 %vm968_vm0, %v969_v4 }
 0x131   :  { %v344_v59 = vmax.f32 %v293_v57, 0.0 }
 0x132   :  { %v297_v60 = vpop.f32.mrb[38].mxu0 }
 0x133   :  { %v298_v61 = vadd.f32 %v1191_v45, %v297_v60  ;;  %v847_v62 = vpop.f32.mrb[39].mxu0  ;;  %926 = vmatmul.mubr.msk.f32.gmra.mrb[36].mxu1 %vm362_vm2, %v344_v59 }
 0x134   :  { %928 = vmatprep.mubr.msk.f32.mxu1 %vm968_vm0, %v969_v4 }
 0x135   :  { %v345_v63 = vmax.f32 %v298_v61, 0.0 }
 0x136   :  { %v302_v0 = vpop.f32.mrb[40].mxu0 }
 0x137   :  { %v303_v1 = vadd.f32 %v1191_v45, %v302_v0  ;;  %v850_v2 = vpop.f32.mrb[41].mxu0  ;;  %929 = vmatmul.mubr.msk.f32.gmra.mrb[38].mxu1 %vm362_vm2, %v345_v63 }
 0x138   :  { %931 = vmatprep.mubr.msk.f32.mxu1 %vm968_vm0, %v969_v4 }
 0x139   :  { %v346_v3 = vmax.f32 %v303_v1, 0.0 }
 0x13a   :  { %v307_v5 = vpop.f32.mrb[42].mxu0 }
 0x13b   :  { %v308_v6 = vadd.f32 %v1191_v45, %v307_v5  ;;  %v853_v7 = vpop.f32.mrb[43].mxu0  ;;  %932 = vmatmul.mubr.msk.f32.gmra.mrb[40].mxu1 %vm362_vm2, %v346_v3 }
 0x13c   :  { %934 = vmatprep.mubr.msk.f32.mxu1 %vm968_vm0, %v969_v4 }
 0x13d   :  { %v347_v8 = vmax.f32 %v308_v6, 0.0 }
 0x13e   :  { %v312_v9 = vpop.f32.mrb[44].mxu0 }
 0x13f   :  { %v313_v10 = vadd.f32 %v1191_v45, %v312_v9  ;;  %v856_v11 = vpop.f32.mrb[45].mxu0  ;;  %935 = vmatmul.mubr.msk.f32.gmra.mrb[42].mxu1 %vm362_vm2, %v347_v8 }
 0x140   :  { %937 = vmatprep.mubr.msk.f32.mxu1 %vm968_vm0, %v969_v4 }
 0x141   :  { %v348_v12 = vmax.f32 %v313_v10, 0.0 }
 0x142   :  { %v317_v13 = vpop.f32.mrb[46].mxu0 }
 0x143   :  { %v318_v14 = vadd.f32 %v1191_v45, %v317_v13  ;;  %v859_v15 = vpop.f32.mrb[47].mxu0  ;;  %938 = vmatmul.mubr.msk.f32.gmra.mrb[44].mxu1 %vm362_vm2, %v348_v12 }
 0x144   :  { %940 = vmatprep.mubr.msk.f32.mxu1 %vm968_vm0, %v969_v4 }
 0x145   :  { %v349_v16 = vmax.f32 %v318_v14, 0.0 }
 0x146   :  { %v322_v17 = vpop.f32.mrb[48].mxu0 }
 0x147   :  { %v323_v18 = vadd.f32 %v1191_v45, %v322_v17  ;;  %v862_v19 = vpop.f32.mrb[49].mxu0  ;;  %941 = vmatmul.mubr.msk.f32.gmra.mrb[46].mxu1 %vm362_vm2, %v349_v16 }
 0x148   :  { %943 = vmatprep.mubr.msk.f32.mxu1 %vm968_vm0, %v969_v4 }
 0x149   :  { %v350_v20 = vmax.f32 %v323_v18, 0.0 }
 0x14b   :  { %944 = vmatmul.mubr.msk.f32.gmra.mrb[48].mxu1 %vm362_vm2, %v350_v20 }
 0x1be   :  { %v504_v22 = vpop.f32.mrb[0].mxu1 }
 0x1bf   :  { %v505_v23 = vadd.f32 %v1294_v21, %v504_v22  ;;  %v873_v24 = vpop.f32.mrb[1].mxu1 }
 0x1c1   :  { %629 = vst.msk [vmem:[%s1426_s5] sm:$0xff] %vm628_vm3, %v505_v23 }
 0x1c2   :  { %v509_v45 = vpop.f32.mrb[2].mxu1 }
 0x1c3   :  { %v510_v4 = vadd.f32 %v1294_v21, %v509_v45  ;;  %v876_v25 = vpop.f32.mrb[3].mxu1 }
 0x1c5   :  { %630 = vst.msk [vmem:[%s1426_s5 + $0x8] sm:$0xff] %vm628_vm3, %v510_v4 }
 0x1c6   :  { %v514_v26 = vpop.f32.mrb[4].mxu1 }
 0x1c7   :  { %v515_v27 = vadd.f32 %v1294_v21, %v514_v26  ;;  %v879_v28 = vpop.f32.mrb[5].mxu1 }
 0x1c9   :  { %631 = vst.msk [vmem:[%s1426_s5 + $0x10] sm:$0xff] %vm628_vm3, %v515_v27 }
 0x1ca   :  { %v519_v29 = vpop.f32.mrb[6].mxu1 }
 0x1cb   :  { %v520_v30 = vadd.f32 %v1294_v21, %v519_v29  ;;  %v882_v31 = vpop.f32.mrb[7].mxu1 }
 0x1cd   :  { %632 = vst.msk [vmem:[%s1426_s5 + $0x18] sm:$0xff] %vm628_vm3, %v520_v30 }
 0x1ce   :  { %v524_v32 = vpop.f32.mrb[8].mxu1 }
 0x1cf   :  { %v525_v33 = vadd.f32 %v1294_v21, %v524_v32  ;;  %v885_v34 = vpop.f32.mrb[9].mxu1 }
 0x1d1   :  { %633 = vst.msk [vmem:[%s1426_s5 + $0x20] sm:$0xff] %vm628_vm3, %v525_v33 }
 0x1d2   :  { %v529_v35 = vpop.f32.mrb[10].mxu1 }
 0x1d3   :  { %v530_v36 = vadd.f32 %v1294_v21, %v529_v35  ;;  %v888_v37 = vpop.f32.mrb[11].mxu1 }
 0x1d5   :  { %634 = vst.msk [vmem:[%s1426_s5 + $0x28] sm:$0xff] %vm628_vm3, %v530_v36 }
 0x1d6   :  { %v534_v38 = vpop.f32.mrb[12].mxu1 }
 0x1d7   :  { %v535_v39 = vadd.f32 %v1294_v21, %v534_v38  ;;  %v891_v40 = vpop.f32.mrb[13].mxu1 }
 0x1d9   :  { %635 = vst.msk [vmem:[%s1426_s5 + $0x30] sm:$0xff] %vm628_vm3, %v535_v39 }
 0x1da   :  { %v539_v41 = vpop.f32.mrb[14].mxu1 }
 0x1db   :  { %v540_v42 = vadd.f32 %v1294_v21, %v539_v41  ;;  %v894_v43 = vpop.f32.mrb[15].mxu1 }
 0x1dd   :  { %636 = vst.msk [vmem:[%s1426_s5 + $0x38] sm:$0xff] %vm628_vm3, %v540_v42 }
 0x1de   :  { %v544_v44 = vpop.f32.mrb[16].mxu1 }
 0x1df   :  { %v545_v46 = vadd.f32 %v1294_v21, %v544_v44  ;;  %v897_v47 = vpop.f32.mrb[17].mxu1 }
 0x1e1   :  { %637 = vst.msk [vmem:[%s1426_s5 + $0x40] sm:$0xff] %vm628_vm3, %v545_v46 }
 0x1e2   :  { %v549_v48 = vpop.f32.mrb[18].mxu1 }
 0x1e3   :  { %v550_v49 = vadd.f32 %v1294_v21, %v549_v48  ;;  %v900_v50 = vpop.f32.mrb[19].mxu1 }
 0x1e5   :  { %638 = vst.msk [vmem:[%s1426_s5 + $0x48] sm:$0xff] %vm628_vm3, %v550_v49 }
 0x1e6   :  { %v554_v51 = vpop.f32.mrb[20].mxu1 }
 0x1e7   :  { %v555_v52 = vadd.f32 %v1294_v21, %v554_v51  ;;  %v903_v53 = vpop.f32.mrb[21].mxu1 }
 0x1e9   :  { %639 = vst.msk [vmem:[%s1426_s5 + $0x50] sm:$0xff] %vm628_vm3, %v555_v52 }
 0x1ea   :  { %v559_v54 = vpop.f32.mrb[22].mxu1 }
 0x1eb   :  { %v560_v55 = vadd.f32 %v1294_v21, %v559_v54  ;;  %v906_v56 = vpop.f32.mrb[23].mxu1 }
 0x1ed   :  { %640 = vst.msk [vmem:[%s1426_s5 + $0x58] sm:$0xff] %vm628_vm3, %v560_v55 }
 0x1ee   :  { %v564_v57 = vpop.f32.mrb[24].mxu1 }
 0x1ef   :  { %v565_v58 = vadd.f32 %v1294_v21, %v564_v57  ;;  %v909_v59 = vpop.f32.mrb[25].mxu1 }
 0x1f1   :  { %641 = vst.msk [vmem:[%s1426_s5 + $0x60] sm:$0xff] %vm628_vm3, %v565_v58 }
 0x1f2   :  { %v569_v60 = vpop.f32.mrb[26].mxu1 }
 0x1f3   :  { %v570_v61 = vadd.f32 %v1294_v21, %v569_v60  ;;  %v912_v62 = vpop.f32.mrb[27].mxu1 }
 0x1f5   :  { %642 = vst.msk [vmem:[%s1426_s5 + $0x68] sm:$0xff] %vm628_vm3, %v570_v61 }
 0x1f6   :  { %v574_v63 = vpop.f32.mrb[28].mxu1 }
 0x1f7   :  { %v575_v0 = vadd.f32 %v1294_v21, %v574_v63  ;;  %v915_v1 = vpop.f32.mrb[29].mxu1 }
 0x1f9   :  { %643 = vst.msk [vmem:[%s1426_s5 + $0x70] sm:$0xff] %vm628_vm3, %v575_v0 }
 0x1fa   :  { %v579_v2 = vpop.f32.mrb[30].mxu1 }
 0x1fb   :  { %v580_v3 = vadd.f32 %v1294_v21, %v579_v2  ;;  %v918_v5 = vpop.f32.mrb[31].mxu1 }
 0x1fd   :  { %644 = vst.msk [vmem:[%s1426_s5 + $0x78] sm:$0xff] %vm628_vm3, %v580_v3 }
 0x1fe   :  { %v584_v6 = vpop.f32.mrb[32].mxu1 }
 0x1ff   :  { %v585_v7 = vadd.f32 %v1294_v21, %v584_v6  ;;  %v921_v8 = vpop.f32.mrb[33].mxu1 }
 0x201   :  { %645 = vst.msk [vmem:[%s1426_s5 + $0x80] sm:$0xff] %vm628_vm3, %v585_v7 }
 0x202   :  { %v589_v9 = vpop.f32.mrb[34].mxu1 }
 0x203   :  { %v590_v10 = vadd.f32 %v1294_v21, %v589_v9  ;;  %v924_v11 = vpop.f32.mrb[35].mxu1 }
 0x205   :  { %646 = vst.msk [vmem:[%s1426_s5 + $0x88] sm:$0xff] %vm628_vm3, %v590_v10 }
 0x206   :  { %v594_v12 = vpop.f32.mrb[36].mxu1 }
 0x207   :  { %v595_v13 = vadd.f32 %v1294_v21, %v594_v12  ;;  %v927_v14 = vpop.f32.mrb[37].mxu1 }
 0x209   :  { %647 = vst.msk [vmem:[%s1426_s5 + $0x90] sm:$0xff] %vm628_vm3, %v595_v13 }
 0x20a   :  { %v599_v15 = vpop.f32.mrb[38].mxu1 }
 0x20b   :  { %v600_v16 = vadd.f32 %v1294_v21, %v599_v15  ;;  %v930_v17 = vpop.f32.mrb[39].mxu1 }
 0x20d   :  { %648 = vst.msk [vmem:[%s1426_s5 + $0x98] sm:$0xff] %vm628_vm3, %v600_v16 }
 0x20e   :  { %v604_v18 = vpop.f32.mrb[40].mxu1 }
 0x20f   :  { %v605_v19 = vadd.f32 %v1294_v21, %v604_v18  ;;  %v933_v20 = vpop.f32.mrb[41].mxu1 }
 0x211   :  { %649 = vst.msk [vmem:[%s1426_s5 + $0xa0] sm:$0xff] %vm628_vm3, %v605_v19 }
 0x212   :  { %v609_v22 = vpop.f32.mrb[42].mxu1 }
 0x213   :  { %v610_v23 = vadd.f32 %v1294_v21, %v609_v22  ;;  %v936_v24 = vpop.f32.mrb[43].mxu1 }
 0x215   :  { %650 = vst.msk [vmem:[%s1426_s5 + $0xa8] sm:$0xff] %vm628_vm3, %v610_v23 }
 0x216   :  { %v614_v45 = vpop.f32.mrb[44].mxu1 }
 0x217   :  { %v615_v4 = vadd.f32 %v1294_v21, %v614_v45  ;;  %v939_v25 = vpop.f32.mrb[45].mxu1 }
 0x219   :  { %651 = vst.msk [vmem:[%s1426_s5 + $0xb0] sm:$0xff] %vm628_vm3, %v615_v4 }
 0x21a   :  { %v619_v26 = vpop.f32.mrb[46].mxu1 }
 0x21b   :  { %v620_v27 = vadd.f32 %v1294_v21, %v619_v26  ;;  %v942_v28 = vpop.f32.mrb[47].mxu1 }
 0x21d   :  { %652 = vst.msk [vmem:[%s1426_s5 + $0xb8] sm:$0xff] %vm628_vm3, %v620_v27 }
 0x21e   :  { %v624_v29 = vpop.f32.mrb[48].mxu1 }
 0x21f   :  { %v625_v30 = vadd.f32 %v1294_v21, %v624_v29  ;;  %v945_v31 = vpop.f32.mrb[49].mxu1 }
 0x221   :  { %653 = vst.msk [vmem:[%s1426_s5 + $0xc0] sm:$0xff] %vm628_vm3, %v625_v30 }

</bundles_post_ra>
